<compile_context>
chip_gen: v5e
topology: v5e:2x2
jax: 0.10.0
libtpu: 0.0.40
codegen_flags: <defaults>
</compile_context>

<pallas_src>
import functools

import jax
import jax.numpy as jnp
from jax.experimental import pallas as pl
from jax.experimental.pallas import tpu as pltpu

# ---------------- configuration (CONFIG in the PyTorch module) --------------
B = 2
SEQ_LEN = 16          # CONFIG.input_length
PRED_LEN = 8          # CONFIG.output_length
ENC_IN = 4            # CONFIG.enc_in
D_MODEL = 32          # CONFIG.dmodel == hidden_size
SEG_LEN = 4           # CONFIG.seg_length
SEG_NUM_X = SEQ_LEN // SEG_LEN
SEG_NUM_Y = PRED_LEN // SEG_LEN
N_ROWS = B * ENC_IN   # recurrent-state rows (batch * channels)

_F32 = jnp.float32
_VMEM = pl.BlockSpec(memory_space=pltpu.MemorySpace.VMEM)

# ---------------- parameter-slab row layout (one DMA) ------------------------
_H, _H3 = D_MODEL, 3 * D_MODEL
_R_CWIH = 0 * _H            # encoder GRUCell W_ih                      (H, 3H)
_R_CWHH = 1 * _H            # encoder GRUCell W_hh                      (H, 3H)
_R_WRESHH = 2 * _H          # W_res @ W_hh   (serial-chain fusion)      (H, 3H)
_R_GWIH = 3 * _H            # decoder GRU W_ih                          (H, 3H)
_R_GWHH = 4 * _H            # decoder GRU W_hh                          (H, 3H)
_R_WRES = 5 * _H            # residual Linear weight   (lanes 0:H)      (H, 3H)
_R_WPRED = 6 * _H           # predict Linear weight    (lanes 0:seg)    (H, 3H)
_R_WEMB = 7 * _H            # valueEmbedding weight, rows 0:seg, lanes 0:H (8, 3H)
_R_BIAS = 7 * _H + 8        # 8 bias rows (indices below)               (8, 3H)
_R_PE = 7 * _H + 16         # positional+channel embedding (lanes 0:H)  (ny*N, 3H)
_SLAB_ROWS = _R_PE + SEG_NUM_Y * N_ROWS

(_B_CGI,     # cell gi bias  = b_ih + [b_hr, b_hz, 0]
 _B_EHH,     # b_res @ W_hh + [0, 0, b_hn]   (added to hoisted e @ W_hh)
 _B_GH0,     # [0, 0, b_hn]                  (packed gh at h_{-1} = 0)
 _B_GBIH,    # decoder b_ih
 _B_GBHH,    # decoder b_hh
 _B_BEMB,    # valueEmbedding bias   (lanes 0:H)
 _B_BRES,    # residual bias         (lanes 0:H)
 _B_BPRED,   # predict bias          (lanes 0:SEG_LEN)
 ) = range(8)


# ----------------------------- fused Pallas kernel ---------------------------
def fused_kernel(x_ref, p_ref, y_ref, *, n_rows):
    """Fused encoder (GRUCell recurrence) + decoder (single GRU step + predict).

    x_ref : (seg_num_x * N, 8)   row = i*N + n  (segment-major), lanes >= seg_len are 0
    p_ref : (_SLAB_ROWS, 3H)     packed parameter slab (layout above)
    y_ref : (N, pred_len)        column = j*seg_len + t
    """
    N = n_rows
    H, H2, H3 = D_MODEL, 2 * D_MODEL, 3 * D_MODEL
    nx, ny = SEG_NUM_X, SEG_NUM_Y

    bias_blk = p_ref[_R_BIAS:_R_BIAS + 8, :]                       # (8, 3H), one load

    def brow(i, width=H3):
        return bias_blk[i:i + 1, :width]                           # (1, width)

    # ---------------- hoisted work (off the serial chain) --------------------
    w_emb = p_ref[_R_WEMB:_R_WEMB + 8, :H]                         # (8, H); pad rows = 0
    e_all = jnp.dot(x_ref[...], w_emb,
                    preferred_element_type=jnp.float32) + brow(_B_BEMB, H)
    e_all = e_all * jax.nn.sigmoid(e_all)                          # SiLU, (nx*N, H)

    cwih = p_ref[_R_CWIH:_R_CWIH + H, :]                           # (H, 3H)
    cwhh = p_ref[_R_CWHH:_R_CWHH + H, :]                           # (H, 3H)
    wres_hh = p_ref[_R_WRESHH:_R_WRESHH + H, :]                    # (H, 3H)
    wres = p_ref[_R_WRES:_R_WRES + H, :H]                          # (H, H)

    # Input-side gate preactivations; r/z hidden biases folded in.
    gi_all = jnp.dot(e_all, cwih, preferred_element_type=jnp.float32) + brow(_B_CGI)
    gi_r_all = gi_all[:, :H]
    gi_z_all = gi_all[:, H:H2]
    gi_n_all = gi_all[:, H2:]
    # Constant part of the NEXT step's hidden preactivation, fused through the
    # residual:  gh_{i+1} = h_i @ W_hh + [0,0,b_hn]
    #                     = e_i @ W_hh + b_res @ W_hh + [0,0,b_hn]
    #                       + h_gru_i @ (W_res @ W_hh)
    ehh_all = jnp.dot(e_all, cwhh, preferred_element_type=jnp.float32) + brow(_B_EHH)
    # Residual bias folded into e before the loop (no per-step broadcast).
    e_res_all = e_all + brow(_B_BRES, H)                           # (nx*N, H)

    # ---------------- encoder GRUCell recurrence (serial) --------------------
    # NOTE: nx == 4 -> static unroll; switch to lax.fori_loop(..., unroll=True)
    # if SEG_NUM_X / D_MODEL is ever scaled up (bounds live ranges).
    h = jnp.zeros((N, H), jnp.float32)
    gh = jnp.broadcast_to(brow(_B_GH0), (N, H3))                   # h_{-1} = 0
    for i in range(nx):
        lo = i * N                                                 # sublane-aligned
        r = jax.nn.sigmoid(gi_r_all[lo:lo + N, :] + gh[:, :H])
        z = jax.nn.sigmoid(gi_z_all[lo:lo + N, :] + gh[:, H:H2])
        n = jnp.tanh(gi_n_all[lo:lo + N, :] + r * gh[:, H2:])      # b_hn carried in gh
        h_gru = (1.0 - z) * n + z * h
        # residual: h_i = e_i + (h_gru @ W_res + b_res)  (Dropout = identity)
        h = e_res_all[lo:lo + N, :] + jnp.dot(
            h_gru, wres, preferred_element_type=jnp.float32)
        if i + 1 < nx:
            # issues in parallel with the residual matmul (both only need h_gru)
            gh = ehh_all[lo:lo + N, :] + jnp.dot(
                h_gru, wres_hh, preferred_element_type=jnp.float32)

    # ---------------- decoder: one GRU step on pe with h0 = hn ---------------
    gwih = p_ref[_R_GWIH:_R_GWIH + H, :]                           # (H, 3H)
    gwhh = p_ref[_R_GWHH:_R_GWHH + H, :]                           # (H, 3H)
    pe = p_ref[_R_PE:_R_PE + ny * N, :H]                           # (ny*N, H)

    dgi = jnp.dot(pe, gwih, preferred_element_type=jnp.float32) + brow(_B_GBIH)
    ghd = jnp.dot(h, gwhh, preferred_element_type=jnp.float32) + brow(_B_GBHH)
    ghd = jnp.concatenate([ghd] * ny, axis=0)                      # h0 == hn for all segs
    h0 = jnp.concatenate([h] * ny, axis=0)                         # (ny*N, H)

    r = jax.nn.sigmoid(dgi[:, :H] + ghd[:, :H])
    z = jax.nn.sigmoid(dgi[:, H:H2] + ghd[:, H:H2])
    ng = jnp.tanh(dgi[:, H2:] + r * ghd[:, H2:])
    hy = (1.0 - z) * ng + z * h0                                   # (ny*N, H)

    w_pred = p_ref[_R_WPRED:_R_WPRED + H, :SEG_LEN]                # (H, seg_len)
    y_all = jnp.dot(hy, w_pred,
                    preferred_element_type=jnp.float32) + brow(_B_BPRED, SEG_LEN)
    # Lane-dense output (N, pred_len): column block j holds output segment j.
    y_ref[...] = jnp.concatenate(
        [y_all[j * N:(j + 1) * N, :] for j in range(ny)], axis=-1)


def fused_pallas(x_all, param_slab, n_rows):
    return pl.pallas_call(
        functools.partial(fused_kernel, n_rows=n_rows),
        out_shape=jax.ShapeDtypeStruct((n_rows, PRED_LEN), _F32),
        in_specs=[_VMEM, _VMEM],
        out_specs=_VMEM,
        cost_estimate=pl.CostEstimate(flops=1_000_000, transcendentals=6_000,
                                      bytes_accessed=110_000),
    )(x_all, param_slab)


# ------------------------------ forward --------------------------------------
def gru_forward(param_slab, x):
    """x: (B, seq_len, enc_in) -> (B, pred_len, enc_in)."""
    Bx, _, C = x.shape
    N = Bx * C
    seq_last = x[:, -1:, :]                                    # (B, 1, enc_in)
    xc = (x - seq_last).transpose(0, 2, 1)                     # (B, enc_in, seq_len)
    # Segment-major dense 2-D slab: row = i*N + n  (n = b*C + c).
    x_all = (xc.reshape(N, SEG_NUM_X, SEG_LEN)
               .transpose(1, 0, 2)
               .reshape(SEG_NUM_X * N, SEG_LEN))
    if SEG_LEN < 8:                                            # K -> 8 (zero lanes)
        x_all = jnp.pad(x_all, ((0, 0), (0, 8 - SEG_LEN)))

    # NOTE: series_decompose(x) + valueEmbedding of the decomposed parts is
    # dead compute in this config branch (use_decompose=False); skipped.
    y = fused_pallas(x_all, param_slab, N)                     # (B*C, pred_len)
    y = y.reshape(Bx, C, PRED_LEN).transpose(0, 2, 1)          # (B, pred_len, enc_in)
    return y + seq_last


# ------------------------- param preparation ----------------------------------
def prepare_params(params, batch):
    """Pack all parameters (plus precomputed pe and fused products) into ONE slab."""
    N = batch * ENC_IN
    H, H3 = D_MODEL, 3 * D_MODEL
    half = H // 2

    def lanes96(a):
        return jnp.pad(a, ((0, 0), (0, H3 - a.shape[1])))

    # positional/channel embedding, segment-major rows: row = j*N + (b*C + c)
    pos = jnp.broadcast_to(params["pos_emb"][:, None, None, :],
                           (SEG_NUM_Y, batch, ENC_IN, half))
    chn = jnp.broadcast_to(params["channel_emb"][None, None, :, :],
                           (SEG_NUM_Y, batch, ENC_IN, half))
    pe = jnp.concatenate([pos, chn], axis=-1).reshape(SEG_NUM_Y * N, H)

    cwhh = params["cell_w_hh"]                                  # (H, 3H)
    b_hh = params["cell_b_hh"]                                  # (1, 3H)
    b_hn_only = jnp.concatenate(
        [jnp.zeros((1, 2 * H), _F32), b_hh[:, 2 * H:]], axis=1)   # [0, 0, b_hn]
    b_hrz_only = jnp.concatenate(
        [b_hh[:, :2 * H], jnp.zeros((1, H), _F32)], axis=1)       # [b_hr, b_hz, 0]

    bias_rows = jnp.concatenate([
        params["cell_b_ih"] + b_hrz_only,           # _B_CGI
        params["b_res"] @ cwhh + b_hn_only,         # _B_EHH
        b_hn_only,                                  # _B_GH0
        params["gru_b_ih"],                         # _B_GBIH
        params["gru_b_hh"],                         # _B_GBHH
        lanes96(params["b_emb"]),                   # _B_BEMB
        lanes96(params["b_res"]),                   # _B_BRES
        lanes96(params["b_pred"]),                  # _B_BPRED
    ], axis=0)                                      # (8, 3H)

    w_emb8 = jnp.pad(params["w_emb"], ((0, 8 - SEG_LEN), (0, 0)))  # (8, H)

    slab = jnp.concatenate([
        params["cell_w_ih"],                        # _R_CWIH
        cwhh,                                       # _R_CWHH
        params["w_res"] @ cwhh,                     # _R_WRESHH  (serial-chain fusion)
        params["gru_w_ih"],                         # _R_GWIH
        params["gru_w_hh"],                         # _R_GWHH
        lanes96(params["w_res"]),                   # _R_WRES
        lanes96(params["w_pred"]),                  # _R_WPRED
        lanes96(w_emb8),                            # _R_WEMB
        bias_rows,                                  # _R_BIAS
        lanes96(pe),                                # _R_PE
    ], axis=0).astype(_F32)
    assert slab.shape == (_SLAB_ROWS, H3), slab.shape
    return slab


# ------------------------------ reference ------------------------------------
def _ref_cell(x, h, w_ih, w_hh, b_ih, b_hh):
    H = h.shape[1]
    gi = x @ w_ih + b_ih
    gh = h @ w_hh + b_hh
    r = jax.nn.sigmoid(gi[:, :H] + gh[:, :H])
    z = jax.nn.sigmoid(gi[:, H:2 * H] + gh[:, H:2 * H])
    n = jnp.tanh(gi[:, 2 * H:] + r * gh[:, 2 * H:])
    return (1.0 - z) * n + z * h


def ref_forward(params, x):
    Bx, _, C = x.shape
    seq_last = x[:, -1:, :]
    xc = (x - seq_last).transpose(0, 2, 1)
    x_seg = xc.reshape(Bx * C, SEG_NUM_X, SEG_LEN)
    h = jnp.zeros((Bx * C, D_MODEL), _F32)
    for i in range(SEG_NUM_X):
        e = x_seg[:, i, :] @ params["w_emb"] + params["b_emb"]
        e = e * jax.nn.sigmoid(e)
        h = _ref_cell(e, h, params["cell_w_ih"], params["cell_w_hh"],
                      params["cell_b_ih"], params["cell_b_hh"])
        h = e + (h @ params["w_res"] + params["b_res"])
    half = D_MODEL // 2
    pe = jnp.concatenate(
        [jnp.broadcast_to(params["pos_emb"][None], (C, SEG_NUM_Y, half)),
         jnp.broadcast_to(params["channel_emb"][:, None], (C, SEG_NUM_Y, half))],
        axis=-1).reshape(C * SEG_NUM_Y, D_MODEL)
    pe = jnp.tile(pe, (Bx, 1))
    h0 = jnp.repeat(h, SEG_NUM_Y, axis=0)
    hy = _ref_cell(pe, h0, params["gru_w_ih"], params["gru_w_hh"],
                   params["gru_b_ih"], params["gru_b_hh"])
    y = hy @ params["w_pred"] + params["b_pred"]
    y = y.reshape(Bx, C, PRED_LEN).transpose(0, 2, 1)
    return y + seq_last


# ------------------------------ params ----------------------------------------
def init_params(key):
    ks = jax.random.split(key, 16)
    s = 0.1
    p = {}
    # valueEmbedding: Linear(seg_len -> d_model) + SiLU
    p["w_emb"] = s * jax.random.normal(ks[0], (SEG_LEN, D_MODEL), _F32)
    p["b_emb"] = s * jax.random.normal(ks[1], (1, D_MODEL), _F32)
    # nn.GRUCell (encoder), gate order (r, z, n); stored as (in, 3H) = W^T.
    # (Real PyTorch weights are (3H, in): transpose before using here.)
    p["cell_w_ih"] = s * jax.random.normal(ks[2], (D_MODEL, 3 * D_MODEL), _F32)
    p["cell_w_hh"] = s * jax.random.normal(ks[3], (D_MODEL, 3 * D_MODEL), _F32)
    p["cell_b_ih"] = s * jax.random.normal(ks[4], (1, 3 * D_MODEL), _F32)
    p["cell_b_hh"] = s * jax.random.normal(ks[5], (1, 3 * D_MODEL), _F32)
    # residual_projection: Dropout (identity) + Linear(d_model -> d_model)
    p["w_res"] = s * jax.random.normal(ks[6], (D_MODEL, D_MODEL), _F32)
    p["b_res"] = s * jax.random.normal(ks[7], (1, D_MODEL), _F32)
    # nn.GRU layer 0 (decoder single step)
    p["gru_w_ih"] = s * jax.random.normal(ks[8], (D_MODEL, 3 * D_MODEL), _F32)
    p["gru_w_hh"] = s * jax.random.normal(ks[9], (D_MODEL, 3 * D_MODEL), _F32)
    p["gru_b_ih"] = s * jax.random.normal(ks[10], (1, 3 * D_MODEL), _F32)
    p["gru_b_hh"] = s * jax.random.normal(ks[11], (1, 3 * D_MODEL), _F32)
    # predict: Dropout (identity) + Linear(d_model -> seg_len)
    p["w_pred"] = s * jax.random.normal(ks[12], (D_MODEL, SEG_LEN), _F32)
    p["b_pred"] = s * jax.random.normal(ks[13], (1, SEG_LEN), _F32)
    # positional / channel embeddings
    p["pos_emb"] = jax.random.normal(ks[14], (SEG_NUM_Y, D_MODEL // 2), _F32)
    p["channel_emb"] = jax.random.normal(ks[15], (ENC_IN, D_MODEL // 2), _F32)
    return p


# ------------------------------- main -----------------------------------------
if __name__ == "__main__":
    key = jax.random.PRNGKey(0)
    pkey, xkey = jax.random.split(key)
    params = init_params(pkey)
    x = jax.random.normal(xkey, (B, SEQ_LEN, ENC_IN), _F32)

    param_slab = prepare_params(params, B)       # param-only derivations (once)
    fwd = jax.jit(gru_forward)
    y = jax.block_until_ready(fwd(param_slab, x))

    y_ref = ref_forward(params, x)
    assert y.shape == (B, PRED_LEN, ENC_IN), y.shape
    err = jnp.max(jnp.abs(y - y_ref))
    assert jnp.allclose(y, y_ref, atol=2e-5, rtol=2e-5), f"mismatch vs ref, max|d|={err}"
    print("KERNEL_OK")
</pallas_src>

<mosaic_0001>
module attributes {stable_mosaic.version = 11 : i64} {
  func.func @fused_kernel(%arg0: memref<32x8xf32, #tpu.memory_space<vmem>>, %arg1: memref<256x96xf32, #tpu.memory_space<vmem>>, %arg2: memref<8x8xf32, #tpu.memory_space<vmem>>) attributes {dimension_semantics = [], scalar_prefetch = 0 : i64, scratch_operands = 0 : i64, tpu.core_type = #tpu.core_type<tc>} {
    %c232 = arith.constant 232 : index
    %c0 = arith.constant 0 : index
    %0 = vector.load %arg1[%c232, %c0] : memref<256x96xf32, #tpu.memory_space<vmem>>, vector<8x96xf32>
    %c224 = arith.constant 224 : index
    %c0_0 = arith.constant 0 : index
    %1 = vector.load %arg1[%c224, %c0_0] : memref<256x96xf32, #tpu.memory_space<vmem>>, vector<8x32xf32>
    %c0_1 = arith.constant 0 : index
    %c0_2 = arith.constant 0 : index
    %2 = vector.load %arg0[%c0_1, %c0_2] : memref<32x8xf32, #tpu.memory_space<vmem>>, vector<32x8xf32>
    %cst = arith.constant dense<0.000000e+00> : vector<32x32xf32>
    %3 = tpu.matmul %2, %1, %cst {dimension_numbers = #tpu.dot_dimension_numbers<[1], [0], [0], [1], [0, 0, 1, 1], [], []>} : vector<32x8xf32>, vector<8x32xf32>, vector<32x32xf32> -> vector<32x32xf32>
    %4 = vector.extract_strided_slice %0 {offsets = [5, 0], sizes = [1, 32], strides = [1, 1]} : vector<8x96xf32> to vector<1x32xf32>
    %5 = vector.broadcast %4 : vector<1x32xf32> to vector<32x32xf32>
    %6 = arith.addf %3, %5 : vector<32x32xf32>
    %7 = arith.negf %6 : vector<32x32xf32>
    %8 = math.exp %7 : vector<32x32xf32>
    %cst_3 = arith.constant 1.000000e+00 : f32
    %9 = vector.broadcast %cst_3 : f32 to vector<32x32xf32>
    %10 = arith.addf %9, %8 : vector<32x32xf32>
    %11 = arith.divf %9, %10 : vector<32x32xf32>
    %12 = arith.mulf %6, %11 : vector<32x32xf32>
    %c0_4 = arith.constant 0 : index
    %c0_5 = arith.constant 0 : index
    %13 = vector.load %arg1[%c0_4, %c0_5] : memref<256x96xf32, #tpu.memory_space<vmem>>, vector<32x96xf32>
    %c32 = arith.constant 32 : index
    %c0_6 = arith.constant 0 : index
    %14 = vector.load %arg1[%c32, %c0_6] : memref<256x96xf32, #tpu.memory_space<vmem>>, vector<32x96xf32>
    %c64 = arith.constant 64 : index
    %c0_7 = arith.constant 0 : index
    %15 = vector.load %arg1[%c64, %c0_7] : memref<256x96xf32, #tpu.memory_space<vmem>>, vector<32x96xf32>
    %c160 = arith.constant 160 : index
    %c0_8 = arith.constant 0 : index
    %16 = vector.load %arg1[%c160, %c0_8] : memref<256x96xf32, #tpu.memory_space<vmem>>, vector<32x32xf32>
    %cst_9 = arith.constant dense<0.000000e+00> : vector<32x96xf32>
    %17 = tpu.matmul %12, %13, %cst_9 {dimension_numbers = #tpu.dot_dimension_numbers<[1], [0], [0], [1], [0, 0, 1, 1], [], []>} : vector<32x32xf32>, vector<32x96xf32>, vector<32x96xf32> -> vector<32x96xf32>
    %18 = vector.extract_strided_slice %0 {offsets = [0, 0], sizes = [1, 96], strides = [1, 1]} : vector<8x96xf32> to vector<1x96xf32>
    %19 = vector.broadcast %18 : vector<1x96xf32> to vector<32x96xf32>
    %20 = arith.addf %17, %19 : vector<32x96xf32>
    %21 = vector.extract_strided_slice %20 {offsets = [0, 0], sizes = [32, 32], strides = [1, 1]} : vector<32x96xf32> to vector<32x32xf32>
    %22 = vector.extract_strided_slice %20 {offsets = [0, 32], sizes = [32, 32], strides = [1, 1]} : vector<32x96xf32> to vector<32x32xf32>
    %23 = vector.extract_strided_slice %20 {offsets = [0, 64], sizes = [32, 32], strides = [1, 1]} : vector<32x96xf32> to vector<32x32xf32>
    %cst_10 = arith.constant dense<0.000000e+00> : vector<32x96xf32>
    %24 = tpu.matmul %12, %14, %cst_10 {dimension_numbers = #tpu.dot_dimension_numbers<[1], [0], [0], [1], [0, 0, 1, 1], [], []>} : vector<32x32xf32>, vector<32x96xf32>, vector<32x96xf32> -> vector<32x96xf32>
    %25 = vector.extract_strided_slice %0 {offsets = [1, 0], sizes = [1, 96], strides = [1, 1]} : vector<8x96xf32> to vector<1x96xf32>
    %26 = vector.broadcast %25 : vector<1x96xf32> to vector<32x96xf32>
    %27 = arith.addf %24, %26 : vector<32x96xf32>
    %28 = vector.extract_strided_slice %0 {offsets = [6, 0], sizes = [1, 32], strides = [1, 1]} : vector<8x96xf32> to vector<1x32xf32>
    %29 = vector.broadcast %28 : vector<1x32xf32> to vector<32x32xf32>
    %30 = arith.addf %12, %29 : vector<32x32xf32>
    %cst_11 = arith.constant 0.000000e+00 : f32
    %31 = vector.broadcast %cst_11 : f32 to vector<8x32xf32>
    %32 = vector.extract_strided_slice %0 {offsets = [2, 0], sizes = [1, 96], strides = [1, 1]} : vector<8x96xf32> to vector<1x96xf32>
    %33 = vector.shape_cast %32 : vector<1x96xf32> to vector<1x96xf32>
    %34 = vector.broadcast %33 : vector<1x96xf32> to vector<8x96xf32>
    %35 = vector.extract_strided_slice %21 {offsets = [0, 0], sizes = [8, 32], strides = [1, 1]} : vector<32x32xf32> to vector<8x32xf32>
    %36 = vector.extract_strided_slice %34 {offsets = [0, 0], sizes = [8, 32], strides = [1, 1]} : vector<8x96xf32> to vector<8x32xf32>
    %37 = arith.addf %35, %36 : vector<8x32xf32>
    %38 = arith.negf %37 : vector<8x32xf32>
    %39 = math.exp %38 : vector<8x32xf32>
    %cst_12 = arith.constant 1.000000e+00 : f32
    %40 = vector.broadcast %cst_12 : f32 to vector<8x32xf32>
    %41 = arith.addf %40, %39 : vector<8x32xf32>
    %42 = arith.divf %40, %41 : vector<8x32xf32>
    %43 = vector.extract_strided_slice %22 {offsets = [0, 0], sizes = [8, 32], strides = [1, 1]} : vector<32x32xf32> to vector<8x32xf32>
    %44 = vector.extract_strided_slice %34 {offsets = [0, 32], sizes = [8, 32], strides = [1, 1]} : vector<8x96xf32> to vector<8x32xf32>
    %45 = arith.addf %43, %44 : vector<8x32xf32>
    %46 = arith.negf %45 : vector<8x32xf32>
    %47 = math.exp %46 : vector<8x32xf32>
    %cst_13 = arith.constant 1.000000e+00 : f32
    %48 = vector.broadcast %cst_13 : f32 to vector<8x32xf32>
    %49 = arith.addf %48, %47 : vector<8x32xf32>
    %50 = arith.divf %48, %49 : vector<8x32xf32>
    %51 = vector.extract_strided_slice %23 {offsets = [0, 0], sizes = [8, 32], strides = [1, 1]} : vector<32x32xf32> to vector<8x32xf32>
    %52 = vector.extract_strided_slice %34 {offsets = [0, 64], sizes = [8, 32], strides = [1, 1]} : vector<8x96xf32> to vector<8x32xf32>
    %53 = arith.mulf %42, %52 : vector<8x32xf32>
    %54 = arith.addf %51, %53 : vector<8x32xf32>
    %55 = math.tanh %54 : vector<8x32xf32>
    %cst_14 = arith.constant 1.000000e+00 : f32
    %56 = vector.broadcast %cst_14 : f32 to vector<8x32xf32>
    %57 = arith.subf %56, %50 : vector<8x32xf32>
    %58 = arith.mulf %57, %55 : vector<8x32xf32>
    %59 = arith.mulf %50, %31 : vector<8x32xf32>
    %60 = arith.addf %58, %59 : vector<8x32xf32>
    %61 = vector.extract_strided_slice %30 {offsets = [0, 0], sizes = [8, 32], strides = [1, 1]} : vector<32x32xf32> to vector<8x32xf32>
    %cst_15 = arith.constant dense<0.000000e+00> : vector<8x32xf32>
    %62 = tpu.matmul %60, %16, %cst_15 {dimension_numbers = #tpu.dot_dimension_numbers<[1], [0], [0], [1], [0, 0, 1, 1], [], []>} : vector<8x32xf32>, vector<32x32xf32>, vector<8x32xf32> -> vector<8x32xf32>
    %63 = arith.addf %61, %62 : vector<8x32xf32>
    %64 = vector.extract_strided_slice %27 {offsets = [0, 0], sizes = [8, 96], strides = [1, 1]} : vector<32x96xf32> to vector<8x96xf32>
    %cst_16 = arith.constant dense<0.000000e+00> : vector<8x96xf32>
    %65 = tpu.matmul %60, %15, %cst_16 {dimension_numbers = #tpu.dot_dimension_numbers<[1], [0], [0], [1], [0, 0, 1, 1], [], []>} : vector<8x32xf32>, vector<32x96xf32>, vector<8x96xf32> -> vector<8x96xf32>
    %66 = arith.addf %64, %65 : vector<8x96xf32>
    %67 = vector.extract_strided_slice %21 {offsets = [8, 0], sizes = [8, 32], strides = [1, 1]} : vector<32x32xf32> to vector<8x32xf32>
    %68 = vector.extract_strided_slice %66 {offsets = [0, 0], sizes = [8, 32], strides = [1, 1]} : vector<8x96xf32> to vector<8x32xf32>
    %69 = arith.addf %67, %68 : vector<8x32xf32>
    %70 = arith.negf %69 : vector<8x32xf32>
    %71 = math.exp %70 : vector<8x32xf32>
    %cst_17 = arith.constant 1.000000e+00 : f32
    %72 = vector.broadcast %cst_17 : f32 to vector<8x32xf32>
    %73 = arith.addf %72, %71 : vector<8x32xf32>
    %74 = arith.divf %72, %73 : vector<8x32xf32>
    %75 = vector.extract_strided_slice %22 {offsets = [8, 0], sizes = [8, 32], strides = [1, 1]} : vector<32x32xf32> to vector<8x32xf32>
    %76 = vector.extract_strided_slice %66 {offsets = [0, 32], sizes = [8, 32], strides = [1, 1]} : vector<8x96xf32> to vector<8x32xf32>
    %77 = arith.addf %75, %76 : vector<8x32xf32>
    %78 = arith.negf %77 : vector<8x32xf32>
    %79 = math.exp %78 : vector<8x32xf32>
    %cst_18 = arith.constant 1.000000e+00 : f32
    %80 = vector.broadcast %cst_18 : f32 to vector<8x32xf32>
    %81 = arith.addf %80, %79 : vector<8x32xf32>
    %82 = arith.divf %80, %81 : vector<8x32xf32>
    %83 = vector.extract_strided_slice %23 {offsets = [8, 0], sizes = [8, 32], strides = [1, 1]} : vector<32x32xf32> to vector<8x32xf32>
    %84 = vector.extract_strided_slice %66 {offsets = [0, 64], sizes = [8, 32], strides = [1, 1]} : vector<8x96xf32> to vector<8x32xf32>
    %85 = arith.mulf %74, %84 : vector<8x32xf32>
    %86 = arith.addf %83, %85 : vector<8x32xf32>
    %87 = math.tanh %86 : vector<8x32xf32>
    %cst_19 = arith.constant 1.000000e+00 : f32
    %88 = vector.broadcast %cst_19 : f32 to vector<8x32xf32>
    %89 = arith.subf %88, %82 : vector<8x32xf32>
    %90 = arith.mulf %89, %87 : vector<8x32xf32>
    %91 = arith.mulf %82, %63 : vector<8x32xf32>
    %92 = arith.addf %90, %91 : vector<8x32xf32>
    %93 = vector.extract_strided_slice %30 {offsets = [8, 0], sizes = [8, 32], strides = [1, 1]} : vector<32x32xf32> to vector<8x32xf32>
    %cst_20 = arith.constant dense<0.000000e+00> : vector<8x32xf32>
    %94 = tpu.matmul %92, %16, %cst_20 {dimension_numbers = #tpu.dot_dimension_numbers<[1], [0], [0], [1], [0, 0, 1, 1], [], []>} : vector<8x32xf32>, vector<32x32xf32>, vector<8x32xf32> -> vector<8x32xf32>
    %95 = arith.addf %93, %94 : vector<8x32xf32>
    %96 = vector.extract_strided_slice %27 {offsets = [8, 0], sizes = [8, 96], strides = [1, 1]} : vector<32x96xf32> to vector<8x96xf32>
    %cst_21 = arith.constant dense<0.000000e+00> : vector<8x96xf32>
    %97 = tpu.matmul %92, %15, %cst_21 {dimension_numbers = #tpu.dot_dimension_numbers<[1], [0], [0], [1], [0, 0, 1, 1], [], []>} : vector<8x32xf32>, vector<32x96xf32>, vector<8x96xf32> -> vector<8x96xf32>
    %98 = arith.addf %96, %97 : vector<8x96xf32>
    %99 = vector.extract_strided_slice %21 {offsets = [16, 0], sizes = [8, 32], strides = [1, 1]} : vector<32x32xf32> to vector<8x32xf32>
    %100 = vector.extract_strided_slice %98 {offsets = [0, 0], sizes = [8, 32], strides = [1, 1]} : vector<8x96xf32> to vector<8x32xf32>
    %101 = arith.addf %99, %100 : vector<8x32xf32>
    %102 = arith.negf %101 : vector<8x32xf32>
    %103 = math.exp %102 : vector<8x32xf32>
    %cst_22 = arith.constant 1.000000e+00 : f32
    %104 = vector.broadcast %cst_22 : f32 to vector<8x32xf32>
    %105 = arith.addf %104, %103 : vector<8x32xf32>
    %106 = arith.divf %104, %105 : vector<8x32xf32>
    %107 = vector.extract_strided_slice %22 {offsets = [16, 0], sizes = [8, 32], strides = [1, 1]} : vector<32x32xf32> to vector<8x32xf32>
    %108 = vector.extract_strided_slice %98 {offsets = [0, 32], sizes = [8, 32], strides = [1, 1]} : vector<8x96xf32> to vector<8x32xf32>
    %109 = arith.addf %107, %108 : vector<8x32xf32>
    %110 = arith.negf %109 : vector<8x32xf32>
    %111 = math.exp %110 : vector<8x32xf32>
    %cst_23 = arith.constant 1.000000e+00 : f32
    %112 = vector.broadcast %cst_23 : f32 to vector<8x32xf32>
    %113 = arith.addf %112, %111 : vector<8x32xf32>
    %114 = arith.divf %112, %113 : vector<8x32xf32>
    %115 = vector.extract_strided_slice %23 {offsets = [16, 0], sizes = [8, 32], strides = [1, 1]} : vector<32x32xf32> to vector<8x32xf32>
    %116 = vector.extract_strided_slice %98 {offsets = [0, 64], sizes = [8, 32], strides = [1, 1]} : vector<8x96xf32> to vector<8x32xf32>
    %117 = arith.mulf %106, %116 : vector<8x32xf32>
    %118 = arith.addf %115, %117 : vector<8x32xf32>
    %119 = math.tanh %118 : vector<8x32xf32>
    %cst_24 = arith.constant 1.000000e+00 : f32
    %120 = vector.broadcast %cst_24 : f32 to vector<8x32xf32>
    %121 = arith.subf %120, %114 : vector<8x32xf32>
    %122 = arith.mulf %121, %119 : vector<8x32xf32>
    %123 = arith.mulf %114, %95 : vector<8x32xf32>
    %124 = arith.addf %122, %123 : vector<8x32xf32>
    %125 = vector.extract_strided_slice %30 {offsets = [16, 0], sizes = [8, 32], strides = [1, 1]} : vector<32x32xf32> to vector<8x32xf32>
    %cst_25 = arith.constant dense<0.000000e+00> : vector<8x32xf32>
    %126 = tpu.matmul %124, %16, %cst_25 {dimension_numbers = #tpu.dot_dimension_numbers<[1], [0], [0], [1], [0, 0, 1, 1], [], []>} : vector<8x32xf32>, vector<32x32xf32>, vector<8x32xf32> -> vector<8x32xf32>
    %127 = arith.addf %125, %126 : vector<8x32xf32>
    %128 = vector.extract_strided_slice %27 {offsets = [16, 0], sizes = [8, 96], strides = [1, 1]} : vector<32x96xf32> to vector<8x96xf32>
    %cst_26 = arith.constant dense<0.000000e+00> : vector<8x96xf32>
    %129 = tpu.matmul %124, %15, %cst_26 {dimension_numbers = #tpu.dot_dimension_numbers<[1], [0], [0], [1], [0, 0, 1, 1], [], []>} : vector<8x32xf32>, vector<32x96xf32>, vector<8x96xf32> -> vector<8x96xf32>
    %130 = arith.addf %128, %129 : vector<8x96xf32>
    %131 = vector.extract_strided_slice %21 {offsets = [24, 0], sizes = [8, 32], strides = [1, 1]} : vector<32x32xf32> to vector<8x32xf32>
    %132 = vector.extract_strided_slice %130 {offsets = [0, 0], sizes = [8, 32], strides = [1, 1]} : vector<8x96xf32> to vector<8x32xf32>
    %133 = arith.addf %131, %132 : vector<8x32xf32>
    %134 = arith.negf %133 : vector<8x32xf32>
    %135 = math.exp %134 : vector<8x32xf32>
    %cst_27 = arith.constant 1.000000e+00 : f32
    %136 = vector.broadcast %cst_27 : f32 to vector<8x32xf32>
    %137 = arith.addf %136, %135 : vector<8x32xf32>
    %138 = arith.divf %136, %137 : vector<8x32xf32>
    %139 = vector.extract_strided_slice %22 {offsets = [24, 0], sizes = [8, 32], strides = [1, 1]} : vector<32x32xf32> to vector<8x32xf32>
    %140 = vector.extract_strided_slice %130 {offsets = [0, 32], sizes = [8, 32], strides = [1, 1]} : vector<8x96xf32> to vector<8x32xf32>
    %141 = arith.addf %139, %140 : vector<8x32xf32>
    %142 = arith.negf %141 : vector<8x32xf32>
    %143 = math.exp %142 : vector<8x32xf32>
    %cst_28 = arith.constant 1.000000e+00 : f32
    %144 = vector.broadcast %cst_28 : f32 to vector<8x32xf32>
    %145 = arith.addf %144, %143 : vector<8x32xf32>
    %146 = arith.divf %144, %145 : vector<8x32xf32>
    %147 = vector.extract_strided_slice %23 {offsets = [24, 0], sizes = [8, 32], strides = [1, 1]} : vector<32x32xf32> to vector<8x32xf32>
    %148 = vector.extract_strided_slice %130 {offsets = [0, 64], sizes = [8, 32], strides = [1, 1]} : vector<8x96xf32> to vector<8x32xf32>
    %149 = arith.mulf %138, %148 : vector<8x32xf32>
    %150 = arith.addf %147, %149 : vector<8x32xf32>
    %151 = math.tanh %150 : vector<8x32xf32>
    %cst_29 = arith.constant 1.000000e+00 : f32
    %152 = vector.broadcast %cst_29 : f32 to vector<8x32xf32>
    %153 = arith.subf %152, %146 : vector<8x32xf32>
    %154 = arith.mulf %153, %151 : vector<8x32xf32>
    %155 = arith.mulf %146, %127 : vector<8x32xf32>
    %156 = arith.addf %154, %155 : vector<8x32xf32>
    %157 = vector.extract_strided_slice %30 {offsets = [24, 0], sizes = [8, 32], strides = [1, 1]} : vector<32x32xf32> to vector<8x32xf32>
    %cst_30 = arith.constant dense<0.000000e+00> : vector<8x32xf32>
    %158 = tpu.matmul %156, %16, %cst_30 {dimension_numbers = #tpu.dot_dimension_numbers<[1], [0], [0], [1], [0, 0, 1, 1], [], []>} : vector<8x32xf32>, vector<32x32xf32>, vector<8x32xf32> -> vector<8x32xf32>
    %159 = arith.addf %157, %158 : vector<8x32xf32>
    %c96 = arith.constant 96 : index
    %c0_31 = arith.constant 0 : index
    %160 = vector.load %arg1[%c96, %c0_31] : memref<256x96xf32, #tpu.memory_space<vmem>>, vector<32x96xf32>
    %c128 = arith.constant 128 : index
    %c0_32 = arith.constant 0 : index
    %161 = vector.load %arg1[%c128, %c0_32] : memref<256x96xf32, #tpu.memory_space<vmem>>, vector<32x96xf32>
    %c240 = arith.constant 240 : index
    %c0_33 = arith.constant 0 : index
    %162 = vector.load %arg1[%c240, %c0_33] : memref<256x96xf32, #tpu.memory_space<vmem>>, vector<16x32xf32>
    %cst_34 = arith.constant dense<0.000000e+00> : vector<16x96xf32>
    %163 = tpu.matmul %162, %160, %cst_34 {dimension_numbers = #tpu.dot_dimension_numbers<[1], [0], [0], [1], [0, 0, 1, 1], [], []>} : vector<16x32xf32>, vector<32x96xf32>, vector<16x96xf32> -> vector<16x96xf32>
    %164 = vector.extract_strided_slice %0 {offsets = [3, 0], sizes = [1, 96], strides = [1, 1]} : vector<8x96xf32> to vector<1x96xf32>
    %165 = vector.broadcast %164 : vector<1x96xf32> to vector<16x96xf32>
    %166 = arith.addf %163, %165 : vector<16x96xf32>
    %cst_35 = arith.constant dense<0.000000e+00> : vector<8x96xf32>
    %167 = tpu.matmul %159, %161, %cst_35 {dimension_numbers = #tpu.dot_dimension_numbers<[1], [0], [0], [1], [0, 0, 1, 1], [], []>} : vector<8x32xf32>, vector<32x96xf32>, vector<8x96xf32> -> vector<8x96xf32>
    %168 = vector.extract_strided_slice %0 {offsets = [4, 0], sizes = [1, 96], strides = [1, 1]} : vector<8x96xf32> to vector<1x96xf32>
    %169 = vector.broadcast %168 : vector<1x96xf32> to vector<8x96xf32>
    %170 = arith.addf %167, %169 : vector<8x96xf32>
    %171 = tpu.concatenate %170, %170 in 0 : vector<8x96xf32>, vector<8x96xf32> -> vector<16x96xf32>
    %172 = tpu.concatenate %159, %159 in 0 : vector<8x32xf32>, vector<8x32xf32> -> vector<16x32xf32>
    %173 = vector.extract_strided_slice %166 {offsets = [0, 0], sizes = [16, 32], strides = [1, 1]} : vector<16x96xf32> to vector<16x32xf32>
    %174 = vector.extract_strided_slice %171 {offsets = [0, 0], sizes = [16, 32], strides = [1, 1]} : vector<16x96xf32> to vector<16x32xf32>
    %175 = arith.addf %173, %174 : vector<16x32xf32>
    %176 = arith.negf %175 : vector<16x32xf32>
    %177 = math.exp %176 : vector<16x32xf32>
    %cst_36 = arith.constant 1.000000e+00 : f32
    %178 = vector.broadcast %cst_36 : f32 to vector<16x32xf32>
    %179 = arith.addf %178, %177 : vector<16x32xf32>
    %180 = arith.divf %178, %179 : vector<16x32xf32>
    %181 = vector.extract_strided_slice %166 {offsets = [0, 32], sizes = [16, 32], strides = [1, 1]} : vector<16x96xf32> to vector<16x32xf32>
    %182 = vector.extract_strided_slice %171 {offsets = [0, 32], sizes = [16, 32], strides = [1, 1]} : vector<16x96xf32> to vector<16x32xf32>
    %183 = arith.addf %181, %182 : vector<16x32xf32>
    %184 = arith.negf %183 : vector<16x32xf32>
    %185 = math.exp %184 : vector<16x32xf32>
    %cst_37 = arith.constant 1.000000e+00 : f32
    %186 = vector.broadcast %cst_37 : f32 to vector<16x32xf32>
    %187 = arith.addf %186, %185 : vector<16x32xf32>
    %188 = arith.divf %186, %187 : vector<16x32xf32>
    %189 = vector.extract_strided_slice %166 {offsets = [0, 64], sizes = [16, 32], strides = [1, 1]} : vector<16x96xf32> to vector<16x32xf32>
    %190 = vector.extract_strided_slice %171 {offsets = [0, 64], sizes = [16, 32], strides = [1, 1]} : vector<16x96xf32> to vector<16x32xf32>
    %191 = arith.mulf %180, %190 : vector<16x32xf32>
    %192 = arith.addf %189, %191 : vector<16x32xf32>
    %193 = math.tanh %192 : vector<16x32xf32>
    %cst_38 = arith.constant 1.000000e+00 : f32
    %194 = vector.broadcast %cst_38 : f32 to vector<16x32xf32>
    %195 = arith.subf %194, %188 : vector<16x32xf32>
    %196 = arith.mulf %195, %193 : vector<16x32xf32>
    %197 = arith.mulf %188, %172 : vector<16x32xf32>
    %198 = arith.addf %196, %197 : vector<16x32xf32>
    %c192 = arith.constant 192 : index
    %c0_39 = arith.constant 0 : index
    %199 = vector.load %arg1[%c192, %c0_39] : memref<256x96xf32, #tpu.memory_space<vmem>>, vector<32x4xf32>
    %cst_40 = arith.constant dense<0.000000e+00> : vector<16x4xf32>
    %200 = tpu.matmul %198, %199, %cst_40 {dimension_numbers = #tpu.dot_dimension_numbers<[1], [0], [0], [1], [0, 0, 1, 1], [], []>} : vector<16x32xf32>, vector<32x4xf32>, vector<16x4xf32> -> vector<16x4xf32>
    %201 = vector.extract_strided_slice %0 {offsets = [7, 0], sizes = [1, 4], strides = [1, 1]} : vector<8x96xf32> to vector<1x4xf32>
    %202 = vector.broadcast %201 : vector<1x4xf32> to vector<16x4xf32>
    %203 = arith.addf %200, %202 : vector<16x4xf32>
    %204 = vector.extract_strided_slice %203 {offsets = [0, 0], sizes = [8, 4], strides = [1, 1]} : vector<16x4xf32> to vector<8x4xf32>
    %205 = vector.extract_strided_slice %203 {offsets = [8, 0], sizes = [8, 4], strides = [1, 1]} : vector<16x4xf32> to vector<8x4xf32>
    %206 = tpu.concatenate %204, %205 in 1 : vector<8x4xf32>, vector<8x4xf32> -> vector<8x8xf32>
    %c0_41 = arith.constant 0 : index
    %c0_42 = arith.constant 0 : index
    %207 = vector.load %arg2[%c0_41, %c0_42] : memref<8x8xf32, #tpu.memory_space<vmem>>, vector<8x8xf32>
    tpu.vector_store %arg2[%c0_41, %c0_42], %206 {strides = array<i32>} : memref<8x8xf32, #tpu.memory_space<vmem>>, vector<8x8xf32>,
    return
  }
}

</mosaic_0001>

<bundles_post_ra>
// kernel: gru_forward.1
= control target key start
LH: loop header
LB: loop body
LE: loop exit
PB: predicated region body
PF: predicated region fallthrough
CT: control target
= control target key end

     0   :  { %vm18_vm0 = vcmask 64512   ;;  %vm157_vm4 = vcmask 261120   ;;  %s853_s8 = smov 64   ;;  %s854_s9 = smov 96   ;;  %s1103_s1 = inlined_call_operand.vmem [shape: f32[256,96], index: 1, kind: input, shape index: {}]   ;;  %s1104_s0 = inlined_call_operand.vmem [shape: f32[32,8], index: 0, kind: input, shape index: {}]   ;;  %s1105_s2 = inlined_call_operand.vmem [shape: f32[8,8], index: 2, kind: output, shape index: {}]  }
   0x1   :  { %v12_v0 = vld [vmem:[%s1103_s1 + $0xe0] sm:$0xff]  ;;  %v14_v2 = vld [vmem:[%s1104_s0 + $0x8] sm:$0xff]  ;;  %v15_v3 = vld [vmem:[%s1104_s0 + $0x10] sm:$0xff]  ;;  %s855_s25 = smov 32  }
   0x2   :  { %v13_v1 = vld [vmem:[%s1104_s0] sm:$0xff]  ;;  %46 = vmatpush.msra.mxu0 %v12_v0  ;;  %v16_v4 = vld [vmem:[%s1104_s0 + $0x18] sm:$0xff]  ;;  %v897_v6 = vld [vmem:[%s1103_s1 + $0xe8] sm:$0xff] }
   0x3   :  { %759 = vmatmul.msk.f32.vlgmr.msra.gmra.mxu0 %vm18_vm0, %v13_v1  ;;  %v143_v5 = vld [vmem:[%s1103_s1 + $0x18] sm:$0xff]  ;;  %v142_v7 = vld [vmem:[%s1103_s1 + $0x10] sm:$0xff]  ;;  %v17_v8 = vperm.slane %v897_v6, 5  ;;  %v141_v9 = vld [vmem:[%s1103_s1 + $0x8] sm:$0xff]  ;;  %v233_v50 = vperm.slane %v897_v6, 2 }
   0x4   :  { %182 = vmatpush.msra.mxu1 %v143_v5  ;;  %793 = vmatpush.msra.mxu2 %v143_v5  ;;  %v140_v10 = vld [vmem:[%s1103_s1] sm:$0xff]  ;;  %v147_v32 = vld [vmem:[%s1103_s1 + $0x38] sm:$0xff]  ;;  %v146_v33 = vld [vmem:[%s1103_s1 + $0x30] sm:$0xff] }
   0x5   :  { %v145_v37 = vld [vmem:[%s1103_s1 + $0x28] sm:$0xff]  ;;  %v144_v43 = vld [vmem:[%s1103_s1 + $0x20] sm:$0xff]  ;;  %255 = vrot.lane.b32.xlu0 %v233_v50, %s853_s8 }
   0x6   :  { %183 = vmatpush.msra.mxu1 %v142_v7  ;;  %794 = vmatpush.msra.mxu2 %v142_v7 }
   0x8   :  { %184 = vmatpush.msra.mxu1 %v141_v9  ;;  %795 = vmatpush.msra.mxu2 %v141_v9 }
   0xa   :  { %185 = vmatpush.msra.mxu1 %v140_v10  ;;  %796 = vmatpush.msra.mxu2 %v140_v10 }
   0xb   :  { %760 = vmatmul.msk.f32.gmra.mxu0 %vm18_vm0, %v14_v2 }
   0xc   :  { %212 = vmatpush.msrb.mxu2 %v147_v32 }
   0xe   :  { %213 = vmatpush.msrb.mxu2 %v146_v33 }
  0x10   :  { %214 = vmatpush.msrb.mxu2 %v145_v37 }
  0x12   :  { %215 = vmatpush.msrb.mxu2 %v144_v43 }
  0x13   :  { %761 = vmatmul.msk.f32.gmra.mxu0 %vm18_vm0, %v15_v3 }
  0x1b   :  { %762 = vmatmul.msk.f32.gmra.mxu0 %vm18_vm0, %v16_v4 }
  0x80   :  { %v48_v11 = vpop.f32.mrf.mxu0 }
  0x81   :  { %v49_v12 = vadd.f32 %v48_v11, %v17_v8 }
  0x83   :  { %v763_v13 = vmul.f32 -1.442695, %v49_v12 }
  0x85   :  { %801 = vpow2.f32 %v763_v13 }
  0x88   :  { %v51_v14 = vpop.f32.mrf.mxu0 }
  0x89   :  { %v909_v15 = vadd.f32 %v51_v14, %v17_v8 }
  0x8b   :  { %v802_v16 = vpop.eup %801  ;;  %v764_v17 = vmul.f32 -1.442695, %v909_v15 }
  0x8c   :  { %v72_v18 = vadd.f32 1.0, %v802_v16 }
  0x8d   :  { %803 = vpow2.f32 %v764_v17  ;;  %v960_v17 = vperm.slane %v897_v6, 0 }
  0x8e   :  { %805 = vrcp.f32 %v72_v18  ;;  %v87_v27 = vand.u32 2147483648, %v72_v18  ;;  %v85_v30 = vand.u32 2147483647, %v72_v18  ;;  %vm81_vm2 = vweird.f32 %v72_v18 }
  0x90   :  { %v54_v19 = vpop.f32.mrf.mxu0  ;;  %v88_v39 = vor.u32 1.1754944e-38, %v87_v27  ;;  %vm86_vm5 = vcmp.eq.f32.partialorder %v85_v30, 8.507059e+37 }
  0x91   :  { %v912_v20 = vadd.f32 %v54_v19, %v17_v8 }
  0x93   :  { %v804_v21 = vpop.eup %803  ;;  %v765_v22 = vmul.f32 -1.442695, %v912_v20 }
  0x94   :  { %v806_v23 = vpop.eup %805  ;;  %v73_v24 = vadd.f32 1.0, %v804_v21 }
  0x95   :  { %v77_v25 = vmul.f32 %v806_v23, %v72_v18  ;;  %807 = vpow2.f32 %v765_v22  ;;  %vm82_vm1 = vweird.f32 %v806_v23 }
  0x96   :  { %809 = vrcp.f32 %v73_v24  ;;  %vm83_vm3 = vmor %vm81_vm2, %vm82_vm1  ;;  %vm96_vm6 = vweird.f32 %v73_v24  ;;  %v102_v45 = vand.u32 2147483648, %v73_v24  ;;  %v100_v48 = vand.u32 2147483647, %v73_v24 }
  0x97   :  { %v78_v26 = vsub.f32 1.0, %v77_v25 }
  0x98   :  { %v57_v28 = vpop.f32.mrf.mxu0  ;;  %v103_v51 = vor.u32 1.1754944e-38, %v102_v45  ;;  %vm101_vm9 = vcmp.eq.f32.partialorder %v100_v48, 8.507059e+37 }
  0x99   :  { %v79_v29 = vmul.f32 %v806_v23, %v78_v26  ;;  %v915_v31 = vadd.f32 %v57_v28, %v17_v8 }
  0x9b   :  { %v808_v34 = vpop.eup %807  ;;  %v80_v35 = vadd.f32 %v806_v23, %v79_v29  ;;  %v766_v36 = vmul.f32 -1.442695, %v915_v31 }
  0x9c   :  { %v810_v38 = vpop.eup %809  ;;  %v74_v40 = vadd.f32 1.0, %v808_v34 }
  0x9d   :  { %v84_v41 = vsel %vm83_vm3, %v806_v23, %v80_v35  ;;  %v92_v42 = vmul.f32 %v810_v38, %v73_v24  ;;  %811 = vpow2.f32 %v766_v36  ;;  %vm97_vm7 = vweird.f32 %v810_v38 }
  0x9e   :  { %v89_v44 = vsel %vm86_vm5, %v88_v39, %v84_v41  ;;  %813 = vrcp.f32 %v74_v40  ;;  %vm98_vm8 = vmor %vm96_vm6, %vm97_vm7  ;;  %vm111_vm10 = vweird.f32 %v74_v40  ;;  %v117_v59 = vand.u32 2147483648, %v74_v40  ;;  %v155_v39 = vld [vmem:[%s1103_s1 + $0xb8] sm:$0xff]  ;;  %v153_v41 = vld [vmem:[%s1103_s1 + $0xa8] sm:$0xff] }
  0x9f   :  { %v930_v46 = vmul.f32 %v89_v44, %v49_v12  ;;  %v93_v47 = vsub.f32 1.0, %v92_v42  ;;  %v115_v62 = vand.u32 2147483647, %v74_v40  ;;  %290 = vmatpush.msra.mxu3 %v155_v39  ;;  %470 = vmatpush.msrb.mxu0 %v155_v39  ;;  %v152_v42 = vld [vmem:[%s1103_s1 + $0xa0] sm:$0xff] }
  0xa0   :  { %v118_v0 = vor.u32 1.1754944e-38, %v117_v59  ;;  %v999_v59 = vperm.slane %v897_v6, 6 }
  0xa1   :  { %v94_v49 = vmul.f32 %v810_v38, %v93_v47  ;;  %767 = vmatmul.msk.f32.vlgmr.msra.gmra.mxu1 %vm157_vm4, %v930_v46  ;;  %vm116_vm13 = vcmp.eq.f32.partialorder %v115_v62, 8.507059e+37 }
  0xa3   :  { %v812_v52 = vpop.eup %811  ;;  %v95_v53 = vadd.f32 %v810_v38, %v94_v49 }
  0xa4   :  { %v814_v54 = vpop.eup %813  ;;  %v75_v55 = vadd.f32 1.0, %v812_v52  ;;  %v150_v52 = vld [vmem:[%s1103_s1 + $0x50] sm:$0xff] }
  0xa5   :  { %v99_v56 = vsel %vm98_vm8, %v810_v38, %v95_v53  ;;  %v107_v57 = vmul.f32 %v814_v54, %v74_v40  ;;  %vm112_vm11 = vweird.f32 %v814_v54  ;;  %v154_v40 = vld [vmem:[%s1103_s1 + $0xb0] sm:$0xff]  ;;  %v149_v53 = vld [vmem:[%s1103_s1 + $0x48] sm:$0xff] }
  0xa6   :  { %v104_v58 = vsel %vm101_vm9, %v103_v51, %v99_v56  ;;  %815 = vrcp.f32 %v75_v55  ;;  %vm113_vm12 = vmor %vm111_vm10, %vm112_vm11  ;;  %vm126_vm14 = vweird.f32 %v75_v55  ;;  %v132_v7 = vand.u32 2147483648, %v75_v55  ;;  %291 = vmatpush.msra.mxu3 %v154_v40  ;;  %471 = vmatpush.msrb.mxu0 %v154_v40  ;;  %v151_v51 = vld [vmem:[%s1103_s1 + $0x58] sm:$0xff] }
  0xa7   :  { %v937_v60 = vmul.f32 %v104_v58, %v909_v15  ;;  %v108_v61 = vsub.f32 1.0, %v107_v57  ;;  %v130_v10 = vand.u32 2147483647, %v75_v55  ;;  %491 = vmatpush.msrb.mxu1 %v151_v51 }
  0xa8   :  { %v133_v12 = vor.u32 1.1754944e-38, %v132_v7  ;;  %292 = vmatpush.msra.mxu3 %v153_v41  ;;  %472 = vmatpush.msrb.mxu0 %v153_v41 }
  0xa9   :  { %v109_v63 = vmul.f32 %v814_v54, %v108_v61  ;;  %768 = vmatmul.msk.f32.gmra.mxu1 %vm157_vm4, %v937_v60  ;;  %vm131_vm2 = vcmp.eq.f32.partialorder %v130_v10, 8.507059e+37  ;;  %v229_v61 = vadd.f32 %v999_v59, %v930_v46 }
  0xaa   :  { %293 = vmatpush.msra.mxu3 %v152_v42  ;;  %473 = vmatpush.msrb.mxu0 %v152_v42 }
  0xab   :  { %v110_v1 = vadd.f32 %v814_v54, %v109_v63  ;;  %492 = vmatpush.msrb.mxu1 %v150_v52 }
  0xac   :  { %v816_v2 = vpop.eup %815  ;;  %311 = vmatpush.msrb.mxu3 %v151_v51 }
  0xad   :  { %v114_v3 = vsel %vm113_vm12, %v814_v54, %v110_v1  ;;  %v122_v4 = vmul.f32 %v816_v2, %v75_v55  ;;  %vm127_vm15 = vweird.f32 %v816_v2  ;;  %v148_v54 = vld [vmem:[%s1103_s1 + $0x40] sm:$0xff]  ;;  %493 = vmatpush.msrb.mxu1 %v149_v53 }
  0xae   :  { %v119_v5 = vsel %vm116_vm13, %v118_v0, %v114_v3  ;;  %vm128_vm1 = vmor %vm126_vm14, %vm127_vm15  ;;  %312 = vmatpush.msrb.mxu3 %v150_v52  ;;  %v1004_v0 = vperm.slane %v897_v6, 1 }
  0xaf   :  { %v942_v8 = vmul.f32 %v119_v5, %v912_v20  ;;  %v123_v9 = vsub.f32 1.0, %v122_v4  ;;  %494 = vmatpush.msrb.mxu1 %v148_v54 }
  0xb0   :  { %313 = vmatpush.msrb.mxu3 %v149_v53 }
  0xb1   :  { %v124_v11 = vmul.f32 %v816_v2, %v123_v9  ;;  %769 = vmatmul.msk.f32.gmra.mxu1 %vm157_vm4, %v942_v8 }
  0xb2   :  { %314 = vmatpush.msrb.mxu3 %v148_v54 }
  0xb3   :  { %v125_v13 = vadd.f32 %v816_v2, %v124_v11 }
  0xb5   :  { %v129_v14 = vsel %vm128_vm1, %v816_v2, %v125_v13 }
  0xb6   :  { %v134_v15 = vsel %vm131_vm2, %v133_v12, %v129_v14 }
  0xb7   :  { %v947_v16 = vmul.f32 %v134_v15, %v915_v31  ;;  %v256_v31 = vpop.permute.xlu0 %255 }
  0xb9   :  { %770 = vmatmul.msk.f32.vlgmr.msra.gmra.mxu2 %vm157_vm4, %v947_v16 }
  0xba   :  { %560 = vmatpush.msra.mxu2 %v155_v39 }
  0xbc   :  { %561 = vmatpush.msra.mxu2 %v154_v40 }
  0xbe   :  { %562 = vmatpush.msra.mxu2 %v153_v41 }
  0xc0   :  { %563 = vmatpush.msra.mxu2 %v152_v42 }
  0xc1   :  { %771 = vmatmul.msk.f32.vlgmr.msrb.gmra.mxu2 %vm157_vm4, %v930_v46 }
  0xc9   :  { %772 = vmatmul.msk.f32.gmra.mxu2 %vm157_vm4, %v937_v60 }
  0xd1   :  { %773 = vmatmul.msk.f32.gmra.mxu2 %vm157_vm4, %v942_v8 }
  0xd9   :  { %774 = vmatmul.msk.f32.gmra.mxu2 %vm157_vm4, %v947_v16 }
 0x11e   :  { %v187_v18 = vpop.f32.mrf.mxu1 }
 0x11f   :  { %v188_v19 = vadd.f32 %v187_v18, %v960_v17 }
 0x121   :  { %v234_v20 = vadd.f32 %v233_v50, %v188_v19 }
 0x123   :  { %v775_v21 = vmul.f32 -1.442695, %v234_v20 }
 0x125   :  { %817 = vpow2.f32 %v775_v21 }
 0x126   :  { %v190_v4 = vpop.f32.mrf.mxu1 }
 0x127   :  { %v191_v5 = vadd.f32 %v190_v4, %v960_v17 }
 0x12b   :  { %v818_v22 = vpop.eup %817 }
 0x12c   :  { %v238_v23 = vadd.f32 1.0, %v818_v22 }
 0x12e   :  { %819 = vrcp.f32 %v238_v23  ;;  %v250_v27 = vand.u32 2147483648, %v238_v23  ;;  %v248_v29 = vand.u32 2147483647, %v238_v23  ;;  %vm244_vm5 = vweird.f32 %v238_v23 }
 0x130   :  { %v251_v32 = vor.u32 1.1754944e-38, %v250_v27  ;;  %vm249_vm7 = vcmp.eq.f32.partialorder %v248_v29, 8.507059e+37 }
 0x134   :  { %v820_v24 = vpop.eup %819 }
 0x135   :  { %v240_v25 = vmul.f32 %v820_v24, %v238_v23  ;;  %vm245_vm3 = vweird.f32 %v820_v24 }
 0x136   :  { %vm246_vm6 = vmor %vm244_vm5, %vm245_vm3 }
 0x137   :  { %v241_v26 = vsub.f32 1.0, %v240_v25 }
 0x139   :  { %v242_v28 = vmul.f32 %v820_v24, %v241_v26 }
 0x13b   :  { %v243_v30 = vadd.f32 %v820_v24, %v242_v28 }
 0x13c   :  { %v978_v49 = vpop.f32.mrf.mxu2 }
 0x13d   :  { %v247_v33 = vsel %vm246_vm6, %v820_v24, %v243_v30 }
 0x13e   :  { %v252_v34 = vsel %vm249_vm7, %v251_v32, %v247_v33 }
 0x13f   :  { %v258_v35 = vmul.f32 %v256_v31, %v252_v34  ;;  %v265_v43 = vsub.f32 1.0, %v252_v34  ;;  %v271_v45 = vmul.f32 0.0, %v252_v34 }
 0x141   :  { %260 = vrot.lane.b32.xlu0 %v258_v35, %s853_s8 }
 0x144   :  { %v217_v50 = vpop.f32.mrf.mxu2 }
 0x145   :  { %v218_v1 = vadd.f32 %v217_v50, %v1004_v0 }
 0x14c   :  { %v992_v55 = vpop.f32.mrf.mxu2 }
 0x154   :  { %v994_v56 = vpop.f32.mrf.mxu2 }
 0x15c   :  { %v226_v57 = vpop.f32.mrf.mxu2 }
 0x1b3   :  { %v261_v36 = vpop.permute.xlu0 %260 }
 0x1b4   :  { %v263_v37 = vadd.f32 %v261_v36, %v188_v19  ;;  %v221_v36 = vadd.f32 %v992_v55, %v1004_v0 }
 0x1b6   :  { %821 = vtanh.f32 %v263_v37 }
 0x1bc   :  { %v822_v38 = vpop.eup %821 }
 0x1bd   :  { %267 = vrot.lane.b32.xlu1 %v822_v38, %s854_s9 }
 0x22f   :  { %v268_v44 = vpop.permute.xlu1 %267 }
 0x230   :  { %v270_v47 = vmul.f32 %v268_v44, %v265_v43 }
 0x232   :  { %v272_v48 = vadd.f32 %v271_v45, %v270_v47 }
 0x234   :  { %274 = vrot.lane.b32.xlu1 %v272_v48, %s854_s9 }
 0x2a6   :  { %v275_v58 = vpop.permute.xlu1 %274 }
 0x2a7   :  { %776 = vmatmul.msk.f32.vlgmr.msra.gmra.mxu3 %vm157_vm4, %v275_v58 }
 0x2a8   :  { %380 = vmatpush.msra.mxu3 %v155_v39  ;;  %v230_v39 = vadd.f32 %v999_v59, %v937_v60 }
 0x2aa   :  { %381 = vmatpush.msra.mxu3 %v154_v40 }
 0x2ac   :  { %382 = vmatpush.msra.mxu3 %v153_v41  ;;  %v193_v41 = vpop.f32.mrf.mxu1 }
 0x2ae   :  { %383 = vmatpush.msra.mxu3 %v152_v42  ;;  %v194_v42 = vadd.f32 %v193_v41, %v960_v17  ;;  %v571_v41 = vld [vmem:[%s1103_s1 + $0x70] sm:$0xff] }
 0x2af   :  { %777 = vmatmul.msk.f32.vlgmr.msrb.gmra.mxu3 %vm157_vm4, %v275_v58 }
 0x2b0   :  { %401 = vmatpush.msrb.mxu3 %v151_v51 }
 0x2b2   :  { %402 = vmatpush.msrb.mxu3 %v150_v52 }
 0x2b4   :  { %403 = vmatpush.msrb.mxu3 %v149_v53 }
 0x2b6   :  { %404 = vmatpush.msrb.mxu3 %v148_v54 }
 0x32a   :  { %v295_v62 = vpop.f32.mrf.mxu3 }
 0x32b   :  { %v298_v63 = vadd.f32 %v295_v62, %v229_v61 }
 0x32d   :  { %358 = vrot.lane.b32.xlu1 %v298_v63, %s855_s25 }
 0x332   :  { %v316_v2 = vpop.f32.mrf.mxu3 }
 0x333   :  { %v319_v3 = vadd.f32 %v316_v2, %v218_v1 }
 0x335   :  { %341 = vrot.lane.b32.xlu2 %v319_v3, %s853_s8  ;;  %v320_v7 = vadd.f32 %v319_v3, %v191_v5 }
 0x337   :  { %v778_v9 = vmul.f32 -1.442695, %v320_v7 }
 0x339   :  { %823 = vpow2.f32 %v778_v9 }
 0x33f   :  { %v824_v46 = vpop.eup %823 }
 0x340   :  { %v324_v10 = vadd.f32 1.0, %v824_v46 }
 0x342   :  { %825 = vrcp.f32 %v324_v10  ;;  %v336_v18 = vand.u32 2147483648, %v324_v10  ;;  %vm330_vm9 = vweird.f32 %v324_v10  ;;  %v334_v19 = vand.u32 2147483647, %v324_v10 }
 0x344   :  { %v337_v21 = vor.u32 1.1754944e-38, %v336_v18  ;;  %vm335_vm11 = vcmp.eq.f32.partialorder %v334_v19, 8.507059e+37  ;;  %v197_v19 = vadd.f32 %v978_v49, %v960_v17 }
 0x348   :  { %v826_v11 = vpop.eup %825 }
 0x349   :  { %v326_v12 = vmul.f32 %v826_v11, %v324_v10  ;;  %vm331_vm8 = vweird.f32 %v826_v11 }
 0x34a   :  { %vm332_vm10 = vmor %vm330_vm9, %vm331_vm8 }
 0x34b   :  { %v327_v13 = vsub.f32 1.0, %v326_v12 }
 0x34d   :  { %v328_v14 = vmul.f32 %v826_v11, %v327_v13 }
 0x34f   :  { %v329_v15 = vadd.f32 %v826_v11, %v328_v14 }
 0x351   :  { %v333_v20 = vsel %vm332_vm10, %v826_v11, %v329_v15  ;;  %v224_v11 = vadd.f32 %v994_v56, %v1004_v0  ;;  %v231_v15 = vadd.f32 %v999_v59, %v942_v8 }
 0x352   :  { %v338_v23 = vsel %vm335_vm11, %v337_v21, %v333_v20 }
 0x353   :  { %v351_v29 = vsub.f32 1.0, %v338_v23 }
 0x38f   :  { %v342_v22 = vpop.permute.xlu2 %341 }
 0x390   :  { %v344_v24 = vmul.f32 %v342_v22, %v338_v23 }
 0x392   :  { %346 = vrot.lane.b32.xlu2 %v344_v24, %s853_s8 }
 0x39f   :  { %v359_v28 = vpop.permute.xlu1 %358 }
 0x3a0   :  { %v361_v31 = vmul.f32 %v359_v28, %v338_v23 }
 0x3ec   :  { %v347_v25 = vpop.permute.xlu2 %346 }
 0x3ed   :  { %v349_v26 = vadd.f32 %v347_v25, %v191_v5 }
 0x3ef   :  { %827 = vtanh.f32 %v349_v26 }
 0x3f5   :  { %v828_v27 = vpop.eup %827 }
 0x3f6   :  { %353 = vrot.lane.b32.xlu0 %v828_v27, %s854_s9 }
 0x468   :  { %v354_v30 = vpop.permute.xlu0 %353 }
 0x469   :  { %v356_v32 = vmul.f32 %v354_v30, %v351_v29 }
 0x46b   :  { %v362_v33 = vadd.f32 %v361_v31, %v356_v32 }
 0x46d   :  { %364 = vrot.lane.b32.xlu2 %v362_v33, %s854_s9 }
 0x4c7   :  { %v365_v34 = vpop.permute.xlu2 %364 }
 0x4c8   :  { %779 = vmatmul.msk.f32.vlgmr.msra.gmra.mxu3 %vm157_vm4, %v365_v34 }
 0x4d0   :  { %780 = vmatmul.msk.f32.vlgmr.msrb.gmra.mxu3 %vm157_vm4, %v365_v34 }
 0x54b   :  { %v385_v35 = vpop.f32.mrf.mxu3 }
 0x54c   :  { %v388_v40 = vadd.f32 %v385_v35, %v230_v39 }
 0x553   :  { %v406_v37 = vpop.f32.mrf.mxu3 }
 0x554   :  { %v409_v38 = vadd.f32 %v406_v37, %v221_v36 }
 0x556   :  { %431 = vrot.lane.b32.xlu0 %v409_v38, %s853_s8  ;;  %v410_v43 = vadd.f32 %v409_v38, %v194_v42 }
 0x558   :  { %v781_v44 = vmul.f32 -1.442695, %v410_v43  ;;  %v570_v43 = vld [vmem:[%s1103_s1 + $0x68] sm:$0xff] }
 0x55a   :  { %829 = vpow2.f32 %v781_v44  ;;  %v575_v44 = vld [vmem:[%s1103_s1 + $0x90] sm:$0xff] }
 0x55e   :  { %448 = vrot.lane.b32.xlu0 %v388_v40, %s855_s25  ;;  %v572_v40 = vld [vmem:[%s1103_s1 + $0x78] sm:$0xff] }
 0x55f   :  { %598 = vmatpush.msra.mxu3 %v572_v40  ;;  %v711_v40 = vld [vmem:[%s1103_s1 + $0xc8] sm:$0xff] }
 0x560   :  { %v830_v45 = vpop.eup %829 }
 0x561   :  { %v414_v47 = vadd.f32 1.0, %v830_v45  ;;  %599 = vmatpush.msra.mxu3 %v571_v41  ;;  %v574_v45 = vld [vmem:[%s1103_s1 + $0x88] sm:$0xff] }
 0x563   :  { %831 = vrcp.f32 %v414_v47  ;;  %v426_v54 = vand.u32 2147483648, %v414_v47  ;;  %vm420_vm13 = vweird.f32 %v414_v47  ;;  %v424_v60 = vand.u32 2147483647, %v414_v47  ;;  %600 = vmatpush.msra.mxu3 %v570_v43 }
 0x565   :  { %v427_v57 = vor.u32 1.1754944e-38, %v426_v54  ;;  %vm425_vm15 = vcmp.eq.f32.partialorder %v424_v60, 8.507059e+37 }
 0x569   :  { %v832_v48 = vpop.eup %831 }
 0x56a   :  { %v416_v50 = vmul.f32 %v832_v48, %v414_v47  ;;  %vm421_vm12 = vweird.f32 %v832_v48  ;;  %v569_v47 = vld [vmem:[%s1103_s1 + $0x60] sm:$0xff] }
 0x56b   :  { %vm422_vm14 = vmor %vm420_vm13, %vm421_vm12  ;;  %601 = vmatpush.msra.mxu3 %v569_v47 }
 0x56c   :  { %v417_v51 = vsub.f32 1.0, %v416_v50  ;;  %v578_v50 = vld [vmem:[%s1103_s1 + $0xf8] sm:$0xff] }
 0x56e   :  { %v418_v52 = vmul.f32 %v832_v48, %v417_v51 }
 0x570   :  { %v419_v53 = vadd.f32 %v832_v48, %v418_v52  ;;  %v573_v52 = vld [vmem:[%s1103_s1 + $0x80] sm:$0xff] }
 0x572   :  { %v423_v55 = vsel %vm422_vm14, %v832_v48, %v419_v53  ;;  %v577_v48 = vld [vmem:[%s1103_s1 + $0xf0] sm:$0xff]  ;;  %v232_v53 = vadd.f32 %v999_v59, %v947_v16  ;;  %vm752_vm14 = vcmask 31744  }
 0x573   :  { %v428_v61 = vsel %vm425_vm15, %v427_v57, %v423_v55  ;;  %786 = vmatmul.msk.f32.vlgmr.msra.gmra.mxu3 %vm157_vm4, %v577_v48  ;;  %v609_v55 = vperm.slane %v897_v6, 4 }
 0x574   :  { %v441_v4 = vsub.f32 1.0, %v428_v61 }
 0x57b   :  { %787 = vmatmul.msk.f32.gmra.mxu3 %vm157_vm4, %v578_v50 }
 0x5c8   :  { %v432_v58 = vpop.permute.xlu0 %431 }
 0x5c9   :  { %v434_v62 = vmul.f32 %v432_v58, %v428_v61 }
 0x5cb   :  { %436 = vrot.lane.b32.xlu1 %v434_v62, %s853_s8  ;;  %v579_v62 = vperm.slane %v897_v6, 3 }
 0x5d0   :  { %v449_v3 = vpop.permute.xlu0 %448 }
 0x5d1   :  { %v451_v7 = vmul.f32 %v449_v3, %v428_v61 }
 0x5f6   :  { %v603_v61 = vpop.f32.mrf.mxu3 }
 0x63d   :  { %v437_v63 = vpop.permute.xlu1 %436 }
 0x63e   :  { %v439_v1 = vadd.f32 %v437_v63, %v194_v42  ;;  %v576_v42 = vld [vmem:[%s1103_s1 + $0x98] sm:$0xff]  ;;  %v606_v63 = vpop.f32.mrf.mxu3 }
 0x63f   :  { %625 = vmatpush.msra.mxu0 %v576_v42 }
 0x640   :  { %833 = vtanh.f32 %v439_v1  ;;  %v604_v1 = vadd.f32 %v603_v61, %v579_v62 }
 0x641   :  { %626 = vmatpush.msra.mxu0 %v575_v44  ;;  %v710_v44 = vld [vmem:[%s1103_s1 + $0xc0] sm:$0xff] }
 0x643   :  { %627 = vmatpush.msra.mxu0 %v574_v45 }
 0x645   :  { %628 = vmatpush.msra.mxu0 %v573_v52 }
 0x646   :  { %v834_v2 = vpop.eup %833 }
 0x647   :  { %443 = vrot.lane.b32.xlu2 %v834_v2, %s854_s9  ;;  %v607_v2 = vadd.f32 %v606_v63, %v579_v62 }
 0x6a1   :  { %v444_v5 = vpop.permute.xlu2 %443 }
 0x6a2   :  { %v446_v9 = vmul.f32 %v444_v5, %v441_v4 }
 0x6a4   :  { %v452_v46 = vadd.f32 %v451_v7, %v446_v9 }
 0x6a6   :  { %454 = vrot.lane.b32.xlu1 %v452_v46, %s854_s9 }
 0x718   :  { %v455_v10 = vpop.permute.xlu1 %454 }
 0x719   :  { %782 = vmatmul.msk.f32.vlgmr.msrb.gmra.mxu0 %vm157_vm4, %v455_v10  ;;  %783 = vmatmul.msk.f32.vlgmr.msrb.gmra.mxu1 %vm157_vm4, %v455_v10 }
 0x796   :  { %v496_v12 = vpop.f32.mrf.mxu1  ;;  %v475_v14 = vpop.f32.mrf.mxu0 }
 0x797   :  { %v499_v13 = vadd.f32 %v496_v12, %v224_v11  ;;  %v478_v18 = vadd.f32 %v475_v14, %v231_v15 }
 0x799   :  { %521 = vrot.lane.b32.xlu2 %v499_v13, %s853_s8  ;;  %v500_v20 = vadd.f32 %v499_v13, %v197_v19 }
 0x79b   :  { %v784_v21 = vmul.f32 -1.442695, %v500_v20 }
 0x79d   :  { %835 = vpow2.f32 %v784_v21 }
 0x7a1   :  { %538 = vrot.lane.b32.xlu2 %v478_v18, %s855_s25 }
 0x7a3   :  { %v836_v22 = vpop.eup %835 }
 0x7a4   :  { %v504_v23 = vadd.f32 1.0, %v836_v22 }
 0x7a6   :  { %837 = vrcp.f32 %v504_v23  ;;  %v516_v27 = vand.u32 2147483648, %v504_v23  ;;  %vm510_vm2 = vweird.f32 %v504_v23  ;;  %v514_v8 = vand.u32 2147483647, %v504_v23 }
 0x7a8   :  { %v517_v29 = vor.u32 1.1754944e-38, %v516_v27  ;;  %vm515_vm5 = vcmp.eq.f32.partialorder %v514_v8, 8.507059e+37 }
 0x7ac   :  { %v838_v56 = vpop.eup %837 }
 0x7ad   :  { %v506_v0 = vmul.f32 %v838_v56, %v504_v23  ;;  %vm511_vm1 = vweird.f32 %v838_v56 }
 0x7ae   :  { %vm512_vm3 = vmor %vm510_vm2, %vm511_vm1 }
 0x7af   :  { %v507_v24 = vsub.f32 1.0, %v506_v0 }
 0x7b1   :  { %v508_v25 = vmul.f32 %v838_v56, %v507_v24 }
 0x7b3   :  { %v509_v26 = vadd.f32 %v838_v56, %v508_v25 }
 0x7b5   :  { %v513_v28 = vsel %vm512_vm3, %v838_v56, %v509_v26 }
 0x7b6   :  { %v518_v49 = vsel %vm515_vm5, %v517_v29, %v513_v28 }
 0x7b7   :  { %v531_v35 = vsub.f32 1.0, %v518_v49 }
 0x7f3   :  { %v522_v17 = vpop.permute.xlu2 %521 }
 0x7f4   :  { %v524_v30 = vmul.f32 %v522_v17, %v518_v49 }
 0x7f6   :  { %526 = vrot.lane.b32.xlu0 %v524_v30, %s853_s8 }
 0x7fb   :  { %v539_v34 = vpop.permute.xlu2 %538 }
 0x7fc   :  { %v541_v37 = vmul.f32 %v539_v34, %v518_v49 }
 0x868   :  { %v527_v31 = vpop.permute.xlu0 %526 }
 0x869   :  { %v529_v32 = vadd.f32 %v527_v31, %v197_v19 }
 0x86b   :  { %839 = vtanh.f32 %v529_v32 }
 0x871   :  { %v840_v33 = vpop.eup %839 }
 0x872   :  { %533 = vrot.lane.b32.xlu1 %v840_v33, %s854_s9 }
 0x8e4   :  { %v534_v36 = vpop.permute.xlu1 %533 }
 0x8e5   :  { %v536_v38 = vmul.f32 %v534_v36, %v531_v35  ;;  %v713_v36 = vld [vmem:[%s1103_s1 + $0xd8] sm:$0xff] }
 0x8e6   :  { %737 = vmatpush.msra.mxu1 %v713_v36 }
 0x8e7   :  { %v542_v39 = vadd.f32 %v541_v37, %v536_v38  ;;  %v712_v37 = vld [vmem:[%s1103_s1 + $0xd0] sm:$0xff]  ;;  %s856_s1 = smov 4  }
 0x8e8   :  { %738 = vmatpush.msra.mxu1 %v712_v37 }
 0x8e9   :  { %544 = vrot.lane.b32.xlu0 %v542_v39, %s854_s9 }
 0x8ea   :  { %739 = vmatpush.msra.mxu1 %v711_v40 }
 0x8ec   :  { %740 = vmatpush.msra.mxu1 %v710_v44 }
 0x95b   :  { %v545_v51 = vpop.permute.xlu0 %544 }
 0x95c   :  { %785 = vmatmul.msk.f32.vlgmr.msra.gmra.mxu2 %vm157_vm4, %v545_v51 }
 0x9df   :  { %v565_v54 = vpop.f32.mrf.mxu2 }
 0x9e0   :  { %v568_v60 = vadd.f32 %v565_v54, %v232_v53 }
 0x9e2   :  { %788 = vmatmul.msk.f32.vlgmr.msra.gmra.mxu0 %vm157_vm4, %v568_v60 }
 0xa5f   :  { %v630_v57 = vpop.f32.mrf.mxu0 }
 0xa60   :  { %v631_v58 = vadd.f32 %v630_v57, %v609_v55 }
 0xa62   :  { %674 = vrot.lane.b32.xlu1 %v631_v58, %s853_s8  ;;  %v633_v3 = vadd.f32 %v631_v58, %v604_v1  ;;  %v634_v4 = vadd.f32 %v631_v58, %v607_v2 }
 0xa64   :  { %v789_v5 = vmul.f32 -1.442695, %v633_v3  ;;  %v790_v16 = vmul.f32 -1.442695, %v634_v4 }
 0xa66   :  { %841 = vpow2.f32 %v789_v5 }
 0xa67   :  { %843 = vpow2.f32 %v790_v16 }
 0xa6c   :  { %v842_v59 = vpop.eup %841 }
 0xa6d   :  { %v844_v7 = vpop.eup %843  ;;  %v641_v9 = vadd.f32 1.0, %v842_v59 }
 0xa6e   :  { %v642_v46 = vadd.f32 1.0, %v844_v7 }
 0xa6f   :  { %845 = vrcp.f32 %v641_v9  ;;  %vm648_vm8 = vweird.f32 %v641_v9  ;;  %v654_v22 = vand.u32 2147483648, %v641_v9  ;;  %v652_v56 = vand.u32 2147483647, %v641_v9 }
 0xa70   :  { %847 = vrcp.f32 %v642_v46  ;;  %v669_v23 = vand.u32 2147483648, %v642_v46  ;;  %vm663_vm10 = vweird.f32 %v642_v46  ;;  %v667_v0 = vand.u32 2147483647, %v642_v46 }
 0xa71   :  { %v655_v26 = vor.u32 1.1754944e-38, %v654_v22  ;;  %vm653_vm12 = vcmp.eq.f32.partialorder %v652_v56, 8.507059e+37 }
 0xa72   :  { %v670_v27 = vor.u32 1.1754944e-38, %v669_v23  ;;  %vm668_vm13 = vcmp.eq.f32.partialorder %v667_v0, 8.507059e+37 }
 0xa75   :  { %v846_v10 = vpop.eup %845 }
 0xa76   :  { %v848_v11 = vpop.eup %847  ;;  %v644_v12 = vmul.f32 %v846_v10, %v641_v9  ;;  %vm649_vm6 = vweird.f32 %v846_v10 }
 0xa77   :  { %v659_v13 = vmul.f32 %v848_v11, %v642_v46  ;;  %vm664_vm7 = vweird.f32 %v848_v11  ;;  %vm650_vm9 = vmor %vm648_vm8, %vm649_vm6 }
 0xa78   :  { %v645_v14 = vsub.f32 1.0, %v644_v12  ;;  %vm665_vm11 = vmor %vm663_vm10, %vm664_vm7 }
 0xa79   :  { %v660_v15 = vsub.f32 1.0, %v659_v13 }
 0xa7a   :  { %v646_v18 = vmul.f32 %v846_v10, %v645_v14 }
 0xa7b   :  { %v661_v19 = vmul.f32 %v848_v11, %v660_v15 }
 0xa7c   :  { %v647_v20 = vadd.f32 %v846_v10, %v646_v18 }
 0xa7d   :  { %v662_v21 = vadd.f32 %v848_v11, %v661_v19 }
 0xa7e   :  { %v651_v24 = vsel %vm650_vm9, %v846_v10, %v647_v20 }
 0xa7f   :  { %v666_v25 = vsel %vm665_vm11, %v848_v11, %v662_v21  ;;  %v656_v28 = vsel %vm653_vm12, %v655_v26, %v651_v24 }
 0xa80   :  { %v671_v29 = vsel %vm668_vm13, %v670_v27, %v666_v25  ;;  %v691_v39 = vsub.f32 1.0, %v656_v28 }
 0xa81   :  { %v692_v47 = vsub.f32 1.0, %v671_v29 }
 0xad4   :  { %v675_v8 = vpop.permute.xlu1 %674 }
 0xad5   :  { %v677_v17 = vmul.f32 %v675_v8, %v656_v28  ;;  %v678_v49 = vmul.f32 %v675_v8, %v671_v29 }
 0xad7   :  { %683 = vrot.lane.b32.xlu0 %v678_v49, %s853_s8  ;;  %681 = vrot.lane.b32.xlu2 %v677_v17, %s853_s8 }
 0xadf   :  { %703 = vrot.lane.b32.xlu2 %v568_v60, %s855_s25  ;;  %v714_v60 = vperm.slane %v897_v6, 7 }
 0xb31   :  { %v682_v30 = vpop.permute.xlu2 %681 }
 0xb32   :  { %v687_v31 = vadd.f32 %v682_v30, %v604_v1 }
 0xb34   :  { %849 = vtanh.f32 %v687_v31 }
 0xb39   :  { %v704_v38 = vpop.permute.xlu2 %703 }
 0xb3a   :  { %v850_v32 = vpop.eup %849  ;;  %v706_v42 = vmul.f32 %v704_v38, %v656_v28  ;;  %v707_v50 = vmul.f32 %v704_v38, %v671_v29 }
 0xb3b   :  { %695 = vrot.lane.b32.xlu1 %v850_v32, %s854_s9 }
 0xb49   :  { %v684_v33 = vpop.permute.xlu0 %683 }
 0xb4a   :  { %v688_v34 = vadd.f32 %v684_v33, %v607_v2 }
 0xb4c   :  { %851 = vtanh.f32 %v688_v34 }
 0xb52   :  { %v852_v35 = vpop.eup %851 }
 0xb53   :  { %697 = vrot.lane.b32.xlu0 %v852_v35, %s854_s9 }
 0xbad   :  { %v696_v41 = vpop.permute.xlu1 %695 }
 0xbae   :  { %v701_v43 = vmul.f32 %v696_v41, %v691_v39 }
 0xbb0   :  { %v708_v45 = vadd.f32 %v706_v42, %v701_v43 }
 0xbb2   :  { %717 = vrot.lane.b32.xlu1 %v708_v45, %s854_s9 }
 0xbc5   :  { %v698_v48 = vpop.permute.xlu0 %697 }
 0xbc6   :  { %v702_v51 = vmul.f32 %v698_v48, %v692_v47 }
 0xbc8   :  { %v709_v52 = vadd.f32 %v707_v50, %v702_v51 }
 0xbca   :  { %719 = vrot.lane.b32.xlu2 %v709_v52, %s854_s9 }
 0xc24   :  { %v718_v53 = vpop.permute.xlu1 %717  ;;  %v720_v54 = vpop.permute.xlu2 %719 }
 0xc25   :  { %791 = vmatmul.msk.f32.vlgmr.msra.gmra.mxu1 %vm157_vm4, %v718_v53 }
 0xc2d   :  { %792 = vmatmul.msk.f32.gmra.mxu1 %vm157_vm4, %v720_v54 }
 0xca2   :  { %v742_v55 = vpop.f32.mrf.mxu1 }
 0xca3   :  { %v743_v57 = vadd.f32 %v742_v55, %v714_v60 }
 0xcaa   :  { %v745_v58 = vpop.f32.mrf.mxu1 }
 0xcab   :  { %v746_v61 = vadd.f32 %v745_v58, %v714_v60 }
 0xcad   :  { %749 = vrot.lane.b32.xlu0 %v746_v61, %s856_s1 }
 0xd1f   :  { %v750_v62 = vpop.permute.xlu0 %749 }
 0xd20   :  { %v753_v63 = vsel %vm752_vm14, %v743_v57, %v750_v62 }
 0xd21   :  { %754 = vst.msk [vmem:[%s1105_s2] sm:$0xff] %vm18_vm0, %v753_v63 }

</bundles_post_ra>
